<compile_context>
chip_gen: v6e
topology: v6e:2x2x1
jax: 0.10.0
libtpu: 0.0.40
codegen_flags: <defaults>
</compile_context>

<pallas_src>
import jax
import jax.numpy as jnp
from jax.experimental import pallas as pl
from jax.experimental.pallas import tpu as pltpu

EPS = 1e-5
NEG_SLOPE = 0.2
LANE = 128
K_PAD = 64            # first-layer contraction dim, 50 -> 64 (8-aligned)

# Flip to True on v6e/v7x to store weights as bf16 (halves weight DMA bytes);
# keep False on v5e and relax the allclose tolerance in __main__ if enabled.
USE_BF16_MATMUL = False


def _round_up(n, m):
    return ((n + m - 1) // m) * m


def _pad_cols(a, target):
    pad = target - a.shape[1]
    return a if pad == 0 else jnp.pad(a, ((0, 0), (0, pad)))


def _pad_rows(a, target):
    pad = target - a.shape[0]
    return a if pad == 0 else jnp.pad(a, ((0, pad), (0, 0)))


# --------------------------------------------------------------------------- kernel
def _make_kernel(segs):
    """segs: dict name -> (lane_offset, width) into the packed vector array.
    Offsets are 128-aligned Python constants, so all slices are static views."""

    def kernel(x_ref, w1_ref, w2_ref, w3_ref, w4_ref, vec_ref, out_ref):
        def seg(name):
            off, n = segs[name]
            return vec_ref[:, off:off + n]            # [1, n], static slice

        def linear(h, w_ref, b):
            w = w_ref[...]                            # f32 or pre-cast bf16
            return jnp.dot(h.astype(w.dtype), w,
                           preferred_element_type=jnp.float32) + b

        def leaky_relu(h):
            return jnp.maximum(h, NEG_SLOPE * h)      # valid since 0 < slope < 1

        def batch_norm(h, g, be):
            # One reduction pass (mean + second moment), gamma/mean/var folded
            # into a single per-channel scale & shift -> one FMA per element.
            mu = jnp.mean(h, axis=0, keepdims=True)            # [1, C]
            ms = jnp.mean(h * h, axis=0, keepdims=True)        # [1, C]
            var = jnp.maximum(ms - mu * mu, 0.0)               # clamp FP cancellation
            scale = jax.lax.rsqrt(var + EPS) * g               # [1, C]
            shift = be - mu * scale                            # [1, C]
            return h * scale + shift

        h = batch_norm(leaky_relu(linear(x_ref[...], w1_ref, seg("b1"))),
                       seg("g1"), seg("be1"))
        h = batch_norm(leaky_relu(linear(h, w2_ref, seg("b2"))),
                       seg("g2"), seg("be2"))
        h = batch_norm(leaky_relu(linear(h, w3_ref, seg("b3"))),
                       seg("g3"), seg("be3"))
        h = linear(h, w4_ref, seg("b4"))
        out_ref[...] = jnp.maximum(h, 0.0)

    return kernel


# --------------------------------------------------------------------------- params
def init_params(key, vector_shape):
    """Torch-equivalent init. Linear weights stored [in, out] (transposed vs.
    torch); biases / BN params stored [1, out]."""
    dims = [(50, 128), (128, 256), (256, 64), (64, vector_shape)]
    params = {}
    keys = jax.random.split(key, 8)
    for idx, (fan_in, fan_out) in enumerate(dims, start=1):
        bound = 1.0 / jnp.sqrt(fan_in)
        params[f"w{idx}"] = jax.random.uniform(
            keys[2 * (idx - 1)], (fan_in, fan_out), jnp.float32, -bound, bound)
        params[f"b{idx}"] = jax.random.uniform(
            keys[2 * (idx - 1) + 1], (1, fan_out), jnp.float32, -bound, bound)
    for idx, c in zip((1, 2, 3), (128, 256, 64)):
        params[f"g{idx}"] = jnp.ones((1, c), jnp.float32)    # torch default gamma=1
        params[f"be{idx}"] = jnp.zeros((1, c), jnp.float32)  # torch default beta=0
    return params


def prepare_params_for_tpu(p, vector_shape):
    """Wrapper-side layout plumbing (done once, outside the hot path):
      * w1 rows padded 50 -> K_PAD (zeros, matched by zero-padded x columns)
      * w4 columns padded vector_shape -> multiple of 128 (lane-dense out store)
      * every [1,C] vector packed into one [1, total] array at 128-aligned offsets
      * optional bf16 pre-cast of the weight matrices only."""
    out_pad = _round_up(vector_shape, LANE)           # 32 -> 128
    w_dtype = jnp.bfloat16 if USE_BF16_MATMUL else jnp.float32

    prepared = {
        "w1": _pad_rows(p["w1"], K_PAD).astype(w_dtype),      # [64, 128]
        "w2": p["w2"].astype(w_dtype),                         # [128, 256]
        "w3": p["w3"].astype(w_dtype),                         # [256, 64]
        "w4": _pad_cols(p["w4"], out_pad).astype(w_dtype),     # [64, out_pad]
        "out_pad": out_pad,
        "k_pad": K_PAD,
    }

    entries = [
        ("b1", p["b1"]), ("g1", p["g1"]), ("be1", p["be1"]),
        ("b2", p["b2"]), ("g2", p["g2"]), ("be2", p["be2"]),
        ("b3", p["b3"]), ("g3", p["g3"]), ("be3", p["be3"]),
        ("b4", _pad_cols(p["b4"], out_pad)),
    ]
    pieces, segs, off = [], {}, 0
    for name, a in entries:
        width = a.shape[1]
        slot = _round_up(width, LANE)
        segs[name] = (off, width)
        pieces.append(_pad_cols(a, slot))
        off += slot
    prepared["vec"] = jnp.concatenate(pieces, axis=1)          # [1, 1664] f32
    prepared["segs"] = segs
    return prepared


# --------------------------------------------------------------------------- wrapper
def generator_forward(x, prepared, vector_shape):
    """x: [B, 50] float32. prepared: output of prepare_params_for_tpu()."""
    B = x.shape[0]
    k_pad = prepared["k_pad"]
    out_pad = prepared["out_pad"]

    x_p = _pad_cols(x, k_pad)                                  # [B, 64]
    args = (x_p, prepared["w1"], prepared["w2"], prepared["w3"],
            prepared["w4"], prepared["vec"])

    vmem_spec = pl.BlockSpec(memory_space=pltpu.MemorySpace.VMEM)

    flops = 2 * B * (k_pad * 128 + 128 * 256 + 256 * 64 + 64 * out_pad)
    bytes_accessed = (sum(int(a.size) * a.dtype.itemsize for a in args)
                      + B * out_pad * 4)
    cost = pl.CostEstimate(flops=flops,
                           transcendentals=128 + 256 + 64,     # per-channel rsqrt
                           bytes_accessed=bytes_accessed)

    out = pl.pallas_call(
        _make_kernel(prepared["segs"]),
        out_shape=jax.ShapeDtypeStruct((B, out_pad), jnp.float32),
        in_specs=[vmem_spec] * len(args),
        out_specs=vmem_spec,
        cost_estimate=cost,
    )(*args)
    # Strip zero padding columns (pure wrapper plumbing).
    return out[:, :vector_shape]


# --------------------------------------------------------------------------- reference
def _reference_forward(x, p):
    """Pure-JAX reference on the ORIGINAL (unpadded) params."""
    def lrelu(h):
        return jnp.where(h > 0, h, NEG_SLOPE * h)

    def bn(h, g, be):
        mu = jnp.mean(h, axis=0, keepdims=True)
        var = jnp.mean((h - mu) ** 2, axis=0, keepdims=True)
        return (h - mu) / jnp.sqrt(var + EPS) * g + be

    h = bn(lrelu(x @ p["w1"] + p["b1"]), p["g1"], p["be1"])
    h = bn(lrelu(h @ p["w2"] + p["b2"]), p["g2"], p["be2"])
    h = bn(lrelu(h @ p["w3"] + p["b3"]), p["g3"], p["be3"])
    return jnp.maximum(h @ p["w4"] + p["b4"], 0.0)


if __name__ == "__main__":
    key = jax.random.PRNGKey(0)
    k_params, k_x = jax.random.split(key)

    batch = 8                 # BatchNorm1d (training mode) needs batch > 1
    vector_shape = 32         # Generator(vector_shape=32)

    base_params = init_params(k_params, vector_shape)
    prepared = prepare_params_for_tpu(base_params, vector_shape)
    x = jax.random.normal(k_x, (batch, 50), jnp.float32)

    out = generator_forward(x, prepared, vector_shape)
    out = jax.block_until_ready(out)

    ref = _reference_forward(x, base_params)
    assert out.shape == (batch, vector_shape)
    assert jnp.allclose(out, ref, atol=2e-4, rtol=2e-4), "mismatch vs reference"

    print("KERNEL_OK")
</pallas_src>

<mosaic_0001>
module attributes {stable_mosaic.version = 11 : i64} {
  func.func @kernel(%arg0: memref<8x64xf32, #tpu.memory_space<vmem>>, %arg1: memref<64x128xf32, #tpu.memory_space<vmem>>, %arg2: memref<128x256xf32, #tpu.memory_space<vmem>>, %arg3: memref<256x64xf32, #tpu.memory_space<vmem>>, %arg4: memref<64x128xf32, #tpu.memory_space<vmem>>, %arg5: memref<1x1664xf32, #tpu.memory_space<vmem>>, %arg6: memref<8x128xf32, #tpu.memory_space<vmem>>) attributes {dimension_semantics = [], scalar_prefetch = 0 : i64, scratch_operands = 0 : i64, tpu.core_type = #tpu.core_type<tc>} {
    %c0 = arith.constant 0 : index
    %c0_0 = arith.constant 0 : index
    %0 = vector.load %arg0[%c0, %c0_0] : memref<8x64xf32, #tpu.memory_space<vmem>>, vector<8x64xf32>
    %c0_1 = arith.constant 0 : index
    %c0_2 = arith.constant 0 : index
    %1 = vector.load %arg5[%c0_1, %c0_2] : memref<1x1664xf32, #tpu.memory_space<vmem>>, vector<1x128xf32>
    %c0_3 = arith.constant 0 : index
    %c0_4 = arith.constant 0 : index
    %2 = vector.load %arg1[%c0_3, %c0_4] : memref<64x128xf32, #tpu.memory_space<vmem>>, vector<64x128xf32>
    %cst = arith.constant dense<0.000000e+00> : vector<8x128xf32>
    %3 = tpu.matmul %0, %2, %cst {dimension_numbers = #tpu.dot_dimension_numbers<[1], [0], [0], [1], [0, 0, 1, 1], [], []>} : vector<8x64xf32>, vector<64x128xf32>, vector<8x128xf32> -> vector<8x128xf32>
    %4 = vector.broadcast %1 : vector<1x128xf32> to vector<8x128xf32>
    %5 = arith.addf %3, %4 : vector<8x128xf32>
    %cst_5 = arith.constant 2.000000e-01 : f32
    %6 = vector.broadcast %cst_5 : f32 to vector<8x128xf32>
    %7 = arith.mulf %6, %5 : vector<8x128xf32>
    %8 = arith.maximumf %5, %7 : vector<8x128xf32>
    %c0_6 = arith.constant 0 : index
    %c128 = arith.constant 128 : index
    %9 = vector.load %arg5[%c0_6, %c128] : memref<1x1664xf32, #tpu.memory_space<vmem>>, vector<1x128xf32>
    %c0_7 = arith.constant 0 : index
    %c256 = arith.constant 256 : index
    %10 = vector.load %arg5[%c0_7, %c256] : memref<1x1664xf32, #tpu.memory_space<vmem>>, vector<1x128xf32>
    %cst_8 = arith.constant dense<0.000000e+00> : vector<128xf32>
    %11 = vector.multi_reduction <add>, %8, %cst_8 [0] : vector<8x128xf32> to vector<128xf32>
    %12 = vector.shape_cast %11 : vector<128xf32> to vector<1x128xf32>
    %cst_9 = arith.constant 8.000000e+00 : f32
    %13 = vector.broadcast %cst_9 : f32 to vector<1x128xf32>
    %14 = arith.divf %12, %13 : vector<1x128xf32>
    %15 = arith.mulf %8, %8 : vector<8x128xf32>
    %cst_10 = arith.constant dense<0.000000e+00> : vector<128xf32>
    %16 = vector.multi_reduction <add>, %15, %cst_10 [0] : vector<8x128xf32> to vector<128xf32>
    %17 = vector.shape_cast %16 : vector<128xf32> to vector<1x128xf32>
    %cst_11 = arith.constant 8.000000e+00 : f32
    %18 = vector.broadcast %cst_11 : f32 to vector<1x128xf32>
    %19 = arith.divf %17, %18 : vector<1x128xf32>
    %20 = arith.mulf %14, %14 : vector<1x128xf32>
    %21 = arith.subf %19, %20 : vector<1x128xf32>
    %cst_12 = arith.constant 0.000000e+00 : f32
    %22 = vector.broadcast %cst_12 : f32 to vector<1x128xf32>
    %23 = arith.maximumf %21, %22 : vector<1x128xf32>
    %cst_13 = arith.constant 9.99999974E-6 : f32
    %24 = vector.broadcast %cst_13 : f32 to vector<1x128xf32>
    %25 = arith.addf %23, %24 : vector<1x128xf32>
    %26 = math.rsqrt %25 : vector<1x128xf32>
    %27 = arith.mulf %26, %9 : vector<1x128xf32>
    %28 = arith.mulf %14, %27 : vector<1x128xf32>
    %29 = arith.subf %10, %28 : vector<1x128xf32>
    %30 = vector.broadcast %27 : vector<1x128xf32> to vector<8x128xf32>
    %31 = arith.mulf %8, %30 : vector<8x128xf32>
    %32 = vector.broadcast %29 : vector<1x128xf32> to vector<8x128xf32>
    %33 = arith.addf %31, %32 : vector<8x128xf32>
    %c0_14 = arith.constant 0 : index
    %c384 = arith.constant 384 : index
    %34 = vector.load %arg5[%c0_14, %c384] : memref<1x1664xf32, #tpu.memory_space<vmem>>, vector<1x256xf32>
    %c0_15 = arith.constant 0 : index
    %c0_16 = arith.constant 0 : index
    %35 = vector.load %arg2[%c0_15, %c0_16] : memref<128x256xf32, #tpu.memory_space<vmem>>, vector<128x256xf32>
    %cst_17 = arith.constant dense<0.000000e+00> : vector<8x256xf32>
    %36 = tpu.matmul %33, %35, %cst_17 {dimension_numbers = #tpu.dot_dimension_numbers<[1], [0], [0], [1], [0, 0, 1, 1], [], []>} : vector<8x128xf32>, vector<128x256xf32>, vector<8x256xf32> -> vector<8x256xf32>
    %37 = vector.broadcast %34 : vector<1x256xf32> to vector<8x256xf32>
    %38 = arith.addf %36, %37 : vector<8x256xf32>
    %cst_18 = arith.constant 2.000000e-01 : f32
    %39 = vector.broadcast %cst_18 : f32 to vector<8x256xf32>
    %40 = arith.mulf %39, %38 : vector<8x256xf32>
    %41 = arith.maximumf %38, %40 : vector<8x256xf32>
    %c0_19 = arith.constant 0 : index
    %c640 = arith.constant 640 : index
    %42 = vector.load %arg5[%c0_19, %c640] : memref<1x1664xf32, #tpu.memory_space<vmem>>, vector<1x256xf32>
    %c0_20 = arith.constant 0 : index
    %c896 = arith.constant 896 : index
    %43 = vector.load %arg5[%c0_20, %c896] : memref<1x1664xf32, #tpu.memory_space<vmem>>, vector<1x256xf32>
    %cst_21 = arith.constant dense<0.000000e+00> : vector<256xf32>
    %44 = vector.multi_reduction <add>, %41, %cst_21 [0] : vector<8x256xf32> to vector<256xf32>
    %45 = vector.shape_cast %44 : vector<256xf32> to vector<1x256xf32>
    %cst_22 = arith.constant 8.000000e+00 : f32
    %46 = vector.broadcast %cst_22 : f32 to vector<1x256xf32>
    %47 = arith.divf %45, %46 : vector<1x256xf32>
    %48 = arith.mulf %41, %41 : vector<8x256xf32>
    %cst_23 = arith.constant dense<0.000000e+00> : vector<256xf32>
    %49 = vector.multi_reduction <add>, %48, %cst_23 [0] : vector<8x256xf32> to vector<256xf32>
    %50 = vector.shape_cast %49 : vector<256xf32> to vector<1x256xf32>
    %cst_24 = arith.constant 8.000000e+00 : f32
    %51 = vector.broadcast %cst_24 : f32 to vector<1x256xf32>
    %52 = arith.divf %50, %51 : vector<1x256xf32>
    %53 = arith.mulf %47, %47 : vector<1x256xf32>
    %54 = arith.subf %52, %53 : vector<1x256xf32>
    %cst_25 = arith.constant 0.000000e+00 : f32
    %55 = vector.broadcast %cst_25 : f32 to vector<1x256xf32>
    %56 = arith.maximumf %54, %55 : vector<1x256xf32>
    %cst_26 = arith.constant 9.99999974E-6 : f32
    %57 = vector.broadcast %cst_26 : f32 to vector<1x256xf32>
    %58 = arith.addf %56, %57 : vector<1x256xf32>
    %59 = math.rsqrt %58 : vector<1x256xf32>
    %60 = arith.mulf %59, %42 : vector<1x256xf32>
    %61 = arith.mulf %47, %60 : vector<1x256xf32>
    %62 = arith.subf %43, %61 : vector<1x256xf32>
    %63 = vector.broadcast %60 : vector<1x256xf32> to vector<8x256xf32>
    %64 = arith.mulf %41, %63 : vector<8x256xf32>
    %65 = vector.broadcast %62 : vector<1x256xf32> to vector<8x256xf32>
    %66 = arith.addf %64, %65 : vector<8x256xf32>
    %c0_27 = arith.constant 0 : index
    %c1152 = arith.constant 1152 : index
    %67 = vector.load %arg5[%c0_27, %c1152] : memref<1x1664xf32, #tpu.memory_space<vmem>>, vector<1x64xf32>
    %c0_28 = arith.constant 0 : index
    %c0_29 = arith.constant 0 : index
    %68 = vector.load %arg3[%c0_28, %c0_29] : memref<256x64xf32, #tpu.memory_space<vmem>>, vector<256x64xf32>
    %cst_30 = arith.constant dense<0.000000e+00> : vector<8x64xf32>
    %69 = tpu.matmul %66, %68, %cst_30 {dimension_numbers = #tpu.dot_dimension_numbers<[1], [0], [0], [1], [0, 0, 1, 1], [], []>} : vector<8x256xf32>, vector<256x64xf32>, vector<8x64xf32> -> vector<8x64xf32>
    %70 = vector.broadcast %67 : vector<1x64xf32> to vector<8x64xf32>
    %71 = arith.addf %69, %70 : vector<8x64xf32>
    %cst_31 = arith.constant 2.000000e-01 : f32
    %72 = vector.broadcast %cst_31 : f32 to vector<8x64xf32>
    %73 = arith.mulf %72, %71 : vector<8x64xf32>
    %74 = arith.maximumf %71, %73 : vector<8x64xf32>
    %c0_32 = arith.constant 0 : index
    %c1280 = arith.constant 1280 : index
    %75 = vector.load %arg5[%c0_32, %c1280] : memref<1x1664xf32, #tpu.memory_space<vmem>>, vector<1x64xf32>
    %c0_33 = arith.constant 0 : index
    %c1408 = arith.constant 1408 : index
    %76 = vector.load %arg5[%c0_33, %c1408] : memref<1x1664xf32, #tpu.memory_space<vmem>>, vector<1x64xf32>
    %cst_34 = arith.constant dense<0.000000e+00> : vector<64xf32>
    %77 = vector.multi_reduction <add>, %74, %cst_34 [0] : vector<8x64xf32> to vector<64xf32>
    %78 = vector.shape_cast %77 : vector<64xf32> to vector<1x64xf32>
    %cst_35 = arith.constant 8.000000e+00 : f32
    %79 = vector.broadcast %cst_35 : f32 to vector<1x64xf32>
    %80 = arith.divf %78, %79 : vector<1x64xf32>
    %81 = arith.mulf %74, %74 : vector<8x64xf32>
    %cst_36 = arith.constant dense<0.000000e+00> : vector<64xf32>
    %82 = vector.multi_reduction <add>, %81, %cst_36 [0] : vector<8x64xf32> to vector<64xf32>
    %83 = vector.shape_cast %82 : vector<64xf32> to vector<1x64xf32>
    %cst_37 = arith.constant 8.000000e+00 : f32
    %84 = vector.broadcast %cst_37 : f32 to vector<1x64xf32>
    %85 = arith.divf %83, %84 : vector<1x64xf32>
    %86 = arith.mulf %80, %80 : vector<1x64xf32>
    %87 = arith.subf %85, %86 : vector<1x64xf32>
    %cst_38 = arith.constant 0.000000e+00 : f32
    %88 = vector.broadcast %cst_38 : f32 to vector<1x64xf32>
    %89 = arith.maximumf %87, %88 : vector<1x64xf32>
    %cst_39 = arith.constant 9.99999974E-6 : f32
    %90 = vector.broadcast %cst_39 : f32 to vector<1x64xf32>
    %91 = arith.addf %89, %90 : vector<1x64xf32>
    %92 = math.rsqrt %91 : vector<1x64xf32>
    %93 = arith.mulf %92, %75 : vector<1x64xf32>
    %94 = arith.mulf %80, %93 : vector<1x64xf32>
    %95 = arith.subf %76, %94 : vector<1x64xf32>
    %96 = vector.broadcast %93 : vector<1x64xf32> to vector<8x64xf32>
    %97 = arith.mulf %74, %96 : vector<8x64xf32>
    %98 = vector.broadcast %95 : vector<1x64xf32> to vector<8x64xf32>
    %99 = arith.addf %97, %98 : vector<8x64xf32>
    %c0_40 = arith.constant 0 : index
    %c1536 = arith.constant 1536 : index
    %100 = vector.load %arg5[%c0_40, %c1536] : memref<1x1664xf32, #tpu.memory_space<vmem>>, vector<1x128xf32>
    %c0_41 = arith.constant 0 : index
    %c0_42 = arith.constant 0 : index
    %101 = vector.load %arg4[%c0_41, %c0_42] : memref<64x128xf32, #tpu.memory_space<vmem>>, vector<64x128xf32>
    %cst_43 = arith.constant dense<0.000000e+00> : vector<8x128xf32>
    %102 = tpu.matmul %99, %101, %cst_43 {dimension_numbers = #tpu.dot_dimension_numbers<[1], [0], [0], [1], [0, 0, 1, 1], [], []>} : vector<8x64xf32>, vector<64x128xf32>, vector<8x128xf32> -> vector<8x128xf32>
    %103 = vector.broadcast %100 : vector<1x128xf32> to vector<8x128xf32>
    %104 = arith.addf %102, %103 : vector<8x128xf32>
    %cst_44 = arith.constant 0.000000e+00 : f32
    %105 = vector.broadcast %cst_44 : f32 to vector<8x128xf32>
    %106 = arith.maximumf %104, %105 : vector<8x128xf32>
    %c0_45 = arith.constant 0 : index
    %c0_46 = arith.constant 0 : index
    %107 = vector.load %arg6[%c0_45, %c0_46] : memref<8x128xf32, #tpu.memory_space<vmem>>, vector<8x128xf32>
    tpu.vector_store %arg6[%c0_45, %c0_46], %106 {strides = array<i32>} : memref<8x128xf32, #tpu.memory_space<vmem>>, vector<8x128xf32>,
    return
  }
}

</mosaic_0001>

<bundles_post_ra>
// kernel: tpu_custom_call.1
= control target key start
LH: loop header
LB: loop body
LE: loop exit
PB: predicated region body
PF: predicated region fallthrough
CT: control target
= control target key end

     0   :  { %11 = vsyncpa [#allocation3], 0  ;;  %s1171_s0 = inlined_call_operand.hbm [shape: f32[8,64], index: 0, kind: input, shape index: {}]   ;;  %s1172_s1 = inlined_call_operand.vmem [shape: f32[64,128], index: 1, kind: input, shape index: {}]   ;;  %s1173_s2 = inlined_call_operand.vmem [shape: f32[128,256], index: 2, kind: input, shape index: {}]   ;;  %s1174_s3 = inlined_call_operand.vmem [shape: f32[256,64], index: 3, kind: input, shape index: {}]   ;;  %s1175_s4 = inlined_call_operand.vmem [shape: f32[64,128], index: 4, kind: input, shape index: {}]   ;;  %s1176_s5 = inlined_call_operand.hbm [shape: f32[1,1664], index: 5, kind: input, shape index: {}]   ;;  %s1177_s6 = inlined_call_operand.hbm [shape: f32[8,128], index: 6, kind: output, shape index: {}]  }
   0x1   :  { %12 = vsyncpa [#allocation6], 0 }
   0x2   :  { %13 = vsyncpa [#allocation4], 0  ;;  %s828_s21 = smov [#allocation2]   ;;  %s829_s23 = smov [#allocation5]  }
   0x3   :  { %s20_s22 = sshll.u32 %s828_s21, 4  ;;  %s38_s24 = sshll.u32 %s829_s23, 4  ;;  %s21_s22 = int_to_ptr.vmem [resolvable:$true] %s20_s22  ;;  %s39_s24 = int_to_ptr.vmem [resolvable:$true] %s38_s24 }
   0x4   :  { %s770_s25 = scalar_lea.vmem %s21_s22, 128  ;;  %p775_p1 = scmp.lt.s32.totalorder %s21_s22, %s21_s22 }
   0x5   :  { %p771_p0 = scmp.ne.s32.totalorder %s21_s22, %s770_s25  ;;  %p776_p2 = scmp.lt.s32.totalorder %s770_s25, %s770_s25 }
   0x7   :  { %p777_p3 = por %p776_p2, %p775_p1 }
   0x9   :  { %p778_p4 = pnand %p777_p3, %p771_p0 }
   0xb   :  { %781 = shalt.err (!%p778_p4)
}
   0xc   :  { %23 = dma.hbm_to_vmem [thread:$0]  %s1171_s0, 128, %s21_s22, [#allocation3]  }
   0xd   :  { %s790_s28 = scalar_lea.vmem %s39_s24, 208  ;;  %s794_s29 = scalar_lea.vmem %s39_s24, 224 }
   0xe   :  { %p791_p5 = scmp.ne.s32.totalorder %s39_s24, %s790_s28  ;;  %p795_p6 = scmp.lt.s32.totalorder %s39_s24, %s39_s24 }
   0xf   :  { %p796_p7 = scmp.lt.s32.totalorder %s794_s29, %s790_s28 }
  0x11   :  { %p797_p8 = por %p796_p7, %p795_p6 }
  0x13   :  { %p798_p9 = pnand %p797_p8, %p791_p5 }
  0x15   :  { %801 = shalt.err (!%p798_p9)
}
  0x16   :  { %41 = dma.hbm_to_vmem [thread:$0]  %s1176_s5, 208, %s39_s24, [#allocation6]  }
  0x17   :  { %822 = dma.done.wait [#allocation3], 128  }
  0x18   :  { %823 = vsyncadd [#allocation3], 4294967168 }
  0x19   :  { %824 = dma.done.wait [#allocation6], 208  }
  0x1a   :  { %825 = vsyncadd [#allocation6], 4294967088  ;;  %v830_v0 = vmov 0.0   ;;  %vm831_vm0 = vmmov 0   ;;  %v57_v1 = vld [vmem:[%s1172_s1 + $0x38] sm:$0xff]  ;;  %v56_v2 = vld [vmem:[%s1172_s1 + $0x30] sm:$0xff] }
  0x1b   :  { %710 = vmatprep.subr.mxu0 %v830_v0  ;;  %726 = vmatprep.mubr.msk.f32.mxu0 %vm831_vm0, %v830_v0  ;;  %v55_v3 = vld [vmem:[%s1172_s1 + $0x28] sm:$0xff]  ;;  %v54_v4 = vld [vmem:[%s1172_s1 + $0x20] sm:$0xff]  ;;  %v53_v5 = vld [vmem:[%s1172_s1 + $0x18] sm:$0xff]  ;;  %vm64_vm1 = vcmask 523264  }
  0x1c   :  { %286 = vmatprep.mubr.f32.mxu1 %v830_v0  ;;  %711 = vmatpush3.msra.mxu0 %v57_v1  ;;  %v52_v6 = vld [vmem:[%s1172_s1 + $0x10] sm:$0xff]  ;;  %v51_v7 = vld [vmem:[%s1172_s1 + $0x8] sm:$0xff]  ;;  %v50_v8 = vld [vmem:[%s1172_s1] sm:$0xff] }
  0x1d   :  { %712 = vmatprep.subr.mxu0 %v830_v0  ;;  %v48_v9 = vld [vmem:[#allocation2] sm:$0xff]  ;;  %v210_v10 = vld [vmem:[%s1173_s2 + $0xf8] sm:$0xff]  ;;  %v209_v11 = vld [vmem:[%s1173_s2 + $0xf0] sm:$0xff] }
  0x1e   :  { %713 = vmatpush3.msra.mxu0 %v56_v2  ;;  %222 = vmatprep.subr.mxu1 %v210_v10  ;;  %v208_v12 = vld [vmem:[%s1173_s2 + $0xe8] sm:$0xff]  ;;  %v207_v13 = vld [vmem:[%s1173_s2 + $0xe0] sm:$0xff]  ;;  %v206_v14 = vld [vmem:[%s1173_s2 + $0xd8] sm:$0xff] }
  0x1f   :  { %714 = vmatprep.subr.mxu0 %v830_v0  ;;  %223 = vmatpush1.msra.mxu1 %v209_v11  ;;  %v205_v15 = vld [vmem:[%s1173_s2 + $0xd0] sm:$0xff]  ;;  %v204_v16 = vld [vmem:[%s1173_s2 + $0xc8] sm:$0xff]  ;;  %v203_v17 = vld [vmem:[%s1173_s2 + $0xc0] sm:$0xff] }
  0x20   :  { %715 = vmatpush3.msra.mxu0 %v55_v3  ;;  %224 = vmatprep.subr.mxu1 %v208_v12  ;;  %v202_v18 = vld [vmem:[%s1173_s2 + $0xb8] sm:$0xff]  ;;  %v201_v19 = vld [vmem:[%s1173_s2 + $0xb0] sm:$0xff]  ;;  %v200_v20 = vld [vmem:[%s1173_s2 + $0xa8] sm:$0xff] }
  0x21   :  { %716 = vmatprep.subr.mxu0 %v830_v0  ;;  %225 = vmatpush1.msra.mxu1 %v207_v13  ;;  %v199_v21 = vld [vmem:[%s1173_s2 + $0xa0] sm:$0xff]  ;;  %v198_v22 = vld [vmem:[%s1173_s2 + $0x98] sm:$0xff]  ;;  %v197_v23 = vld [vmem:[%s1173_s2 + $0x90] sm:$0xff] }
  0x22   :  { %717 = vmatpush3.msra.mxu0 %v54_v4  ;;  %226 = vmatprep.subr.mxu1 %v206_v14  ;;  %v196_v24 = vld [vmem:[%s1173_s2 + $0x88] sm:$0xff]  ;;  %v195_v25 = vld [vmem:[%s1173_s2 + $0x80] sm:$0xff]  ;;  %v194_v26 = vld [vmem:[%s1173_s2 + $0x78] sm:$0xff]  ;;  %v166_v4 = vlaneseq }
  0x23   :  { %718 = vmatprep.subr.mxu0 %v830_v0  ;;  %227 = vmatpush1.msra.mxu1 %v205_v15  ;;  %v193_v27 = vld [vmem:[%s1173_s2 + $0x70] sm:$0xff]  ;;  %v192_v28 = vld [vmem:[%s1173_s2 + $0x68] sm:$0xff]  ;;  %v191_v29 = vld [vmem:[%s1173_s2 + $0x60] sm:$0xff] }
  0x24   :  { %719 = vmatpush3.msra.mxu0 %v53_v5  ;;  %228 = vmatprep.subr.mxu1 %v204_v16  ;;  %v190_v30 = vld [vmem:[%s1173_s2 + $0x58] sm:$0xff]  ;;  %v189_v31 = vld [vmem:[%s1173_s2 + $0x50] sm:$0xff]  ;;  %v188_v32 = vld [vmem:[%s1173_s2 + $0x48] sm:$0xff]  ;;  %v1008_v5 = vshrl.u32 %v166_v4, 7 }
  0x25   :  { %720 = vmatprep.subr.mxu0 %v830_v0  ;;  %229 = vmatpush1.msra.mxu1 %v203_v17  ;;  %v187_v33 = vld [vmem:[%s1173_s2 + $0x40] sm:$0xff]  ;;  %v186_v34 = vld [vmem:[%s1173_s2 + $0x38] sm:$0xff]  ;;  %v185_v35 = vld [vmem:[%s1173_s2 + $0x30] sm:$0xff] }
  0x26   :  { %721 = vmatpush3.msra.mxu0 %v52_v6  ;;  %230 = vmatprep.subr.mxu1 %v202_v18  ;;  %v184_v36 = vld [vmem:[%s1173_s2 + $0x28] sm:$0xff]  ;;  %v183_v37 = vld [vmem:[%s1173_s2 + $0x20] sm:$0xff]  ;;  %v182_v38 = vld [vmem:[%s1173_s2 + $0x18] sm:$0xff] }
  0x27   :  { %722 = vmatprep.subr.mxu0 %v830_v0  ;;  %231 = vmatpush1.msra.mxu1 %v201_v19  ;;  %v181_v39 = vld [vmem:[%s1173_s2 + $0x10] sm:$0xff]  ;;  %v180_v40 = vld [vmem:[%s1173_s2 + $0x8] sm:$0xff]  ;;  %v179_v41 = vld [vmem:[%s1173_s2] sm:$0xff] }
  0x28   :  { %723 = vmatpush3.msra.mxu0 %v51_v7  ;;  %232 = vmatprep.subr.mxu1 %v200_v20  ;;  %v652_v42 = vld [vmem:[#allocation5] ss:$0 sm:$0xff]  ;;  %v140_v6 = vld [vmem:[#allocation5 + $0x1] sm:$0x1]  ;;  %v1011_v7 = vsub.s32 0, %v1008_v5  ;;  %v428_v17 = vld [vmem:[%s1174_s3 + $0xf8] sm:$0xff] }
  0x29   :  { %724 = vmatprep.subr.mxu0 %v830_v0  ;;  %233 = vmatpush1.msra.mxu1 %v199_v21  ;;  %v141_v10 = vld [vmem:[#allocation5 + $0x2] sm:$0x1]  ;;  %v412_v18 = vld [vmem:[%s1174_s3 + $0x78] sm:$0xff]  ;;  %v427_v19 = vld [vmem:[%s1174_s3 + $0xf0] sm:$0xff] }
  0x2a   :  { %725 = vmatpush3.msra.mxu0 %v50_v8  ;;  %234 = vmatprep.subr.mxu1 %v198_v22  ;;  %v411_v20 = vld [vmem:[%s1174_s3 + $0x70] sm:$0xff]  ;;  %v426_v21 = vld [vmem:[%s1174_s3 + $0xe8] sm:$0xff] }
  0x2b   :  { %727 = vmatmul.mubr.msk.f32.vlgmr.msra.gmra.mxu0 %vm64_vm1, %v48_v9  ;;  %235 = vmatpush1.msra.mxu1 %v197_v23  ;;  %v410_v22 = vld [vmem:[%s1174_s3 + $0x68] sm:$0xff]  ;;  %v425_v23 = vld [vmem:[%s1174_s3 + $0xe0] sm:$0xff] }
  0x2c   :  { %236 = vmatprep.subr.mxu1 %v196_v24  ;;  %666 = vmatprep.subr.mxu0 %v428_v17  ;;  %v409_v24 = vld [vmem:[%s1174_s3 + $0x60] sm:$0xff] }
  0x2d   :  { %237 = vmatpush1.msra.mxu1 %v195_v25  ;;  %667 = vmatpush3.msra.mxu0 %v412_v18  ;;  %v424_v25 = vld [vmem:[%s1174_s3 + $0xd8] sm:$0xff] }
  0x2e   :  { %238 = vmatprep.subr.mxu1 %v194_v26  ;;  %668 = vmatprep.subr.mxu0 %v427_v19  ;;  %v408_v26 = vld [vmem:[%s1174_s3 + $0x58] sm:$0xff] }
  0x2f   :  { %239 = vmatpush1.msra.mxu1 %v193_v27  ;;  %669 = vmatpush3.msra.mxu0 %v411_v20  ;;  %v423_v27 = vld [vmem:[%s1174_s3 + $0xd0] sm:$0xff] }
  0x30   :  { %240 = vmatprep.subr.mxu1 %v192_v28  ;;  %670 = vmatprep.subr.mxu0 %v426_v21  ;;  %v407_v28 = vld [vmem:[%s1174_s3 + $0x50] sm:$0xff] }
  0x31   :  { %241 = vmatpush1.msra.mxu1 %v191_v29  ;;  %671 = vmatpush3.msra.mxu0 %v410_v22  ;;  %v422_v29 = vld [vmem:[%s1174_s3 + $0xc8] sm:$0xff] }
  0x32   :  { %242 = vmatprep.subr.mxu1 %v190_v30  ;;  %672 = vmatprep.subr.mxu0 %v425_v23  ;;  %v406_v30 = vld [vmem:[%s1174_s3 + $0x48] sm:$0xff] }
  0x33   :  { %243 = vmatpush1.msra.mxu1 %v189_v31  ;;  %673 = vmatpush3.msra.mxu0 %v409_v24  ;;  %v421_v31 = vld [vmem:[%s1174_s3 + $0xc0] sm:$0xff] }
  0x34   :  { %244 = vmatprep.subr.mxu1 %v188_v32  ;;  %674 = vmatprep.subr.mxu0 %v424_v25  ;;  %v405_v32 = vld [vmem:[%s1174_s3 + $0x40] sm:$0xff] }
  0x35   :  { %245 = vmatpush1.msra.mxu1 %v187_v33  ;;  %675 = vmatpush3.msra.mxu0 %v408_v26  ;;  %v420_v33 = vld [vmem:[%s1174_s3 + $0xb8] sm:$0xff] }
  0x36   :  { %246 = vmatprep.subr.mxu1 %v186_v34  ;;  %676 = vmatprep.subr.mxu0 %v423_v27  ;;  %v404_v34 = vld [vmem:[%s1174_s3 + $0x38] sm:$0xff] }
  0x37   :  { %247 = vmatpush1.msra.mxu1 %v185_v35  ;;  %677 = vmatpush3.msra.mxu0 %v407_v28  ;;  %v419_v35 = vld [vmem:[%s1174_s3 + $0xb0] sm:$0xff] }
  0x38   :  { %248 = vmatprep.subr.mxu1 %v184_v36  ;;  %678 = vmatprep.subr.mxu0 %v422_v29  ;;  %v403_v36 = vld [vmem:[%s1174_s3 + $0x30] sm:$0xff] }
  0x39   :  { %249 = vmatpush1.msra.mxu1 %v183_v37  ;;  %679 = vmatpush3.msra.mxu0 %v406_v30  ;;  %v418_v37 = vld [vmem:[%s1174_s3 + $0xa8] sm:$0xff] }
  0x3a   :  { %250 = vmatprep.subr.mxu1 %v182_v38  ;;  %680 = vmatprep.subr.mxu0 %v421_v31  ;;  %v402_v38 = vld [vmem:[%s1174_s3 + $0x28] sm:$0xff] }
  0x3b   :  { %251 = vmatpush1.msra.mxu1 %v181_v39  ;;  %681 = vmatpush3.msra.mxu0 %v405_v32  ;;  %v417_v39 = vld [vmem:[%s1174_s3 + $0xa0] sm:$0xff] }
  0x3c   :  { %252 = vmatprep.subr.mxu1 %v180_v40  ;;  %682 = vmatprep.subr.mxu0 %v420_v33  ;;  %v401_v40 = vld [vmem:[%s1174_s3 + $0x20] sm:$0xff] }
  0x3d   :  { %253 = vmatpush1.msra.mxu1 %v179_v41  ;;  %683 = vmatpush3.msra.mxu0 %v404_v34  ;;  %v416_v41 = vld [vmem:[%s1174_s3 + $0x98] sm:$0xff] }
  0x3e   :  { %729 = vmatprep.subr.mxu1 %v830_v0  ;;  %684 = vmatprep.subr.mxu0 %v419_v35 }
  0x3f   :  { %685 = vmatpush3.msra.mxu0 %v403_v36 }
  0x40   :  { %686 = vmatprep.subr.mxu0 %v418_v37 }
  0x41   :  { %687 = vmatpush3.msra.mxu0 %v402_v38  ;;  %v297_v38 = vld [vmem:[#allocation5 + $0x5] sm:$0x3] }
  0x42   :  { %688 = vmatprep.subr.mxu0 %v417_v39  ;;  %v343_v39 = vrot.slane %v297_v38, %v1011_v7 }
  0x43   :  { %689 = vmatpush3.msra.mxu0 %v401_v40  ;;  %v832_v40 = vmov 1966171168  }
  0x44   :  { %690 = vmatprep.subr.mxu0 %v416_v41  ;;  %v358_v41 = vunpack.c.l.s4 %v832_v40  ;;  %v508_v40 = vld [vmem:[#allocation5 + $0xb] sm:$0x1] }
  0xeb   :  { %v134_v43 = vpop.f32.mrf.mxu0 }
  0xec   :  { %v135_v44 = vadd.f32 %v652_v42, %v134_v43  ;;  %v400_v42 = vld [vmem:[%s1174_s3 + $0x18] sm:$0xff]  ;;  %v415_v43 = vld [vmem:[%s1174_s3 + $0x90] sm:$0xff] }
  0xed   :  { %v728_v45 = vpop.f32.mrf.mxu0  ;;  %691 = vmatpush3.msra.mxu0 %v400_v42 }
  0xee   :  { %v138_v46 = vmul.f32 0.2, %v135_v44  ;;  %v414_v45 = vld [vmem:[%s1174_s3 + $0x88] sm:$0xff]  ;;  %692 = vmatprep.subr.mxu0 %v415_v43 }
  0xf0   :  { %v139_v47 = vmax.f32 %v135_v44, %v138_v46  ;;  %v399_v44 = vld [vmem:[%s1174_s3 + $0x10] sm:$0xff]  ;;  %v398_v46 = vld [vmem:[%s1174_s3 + $0x8] sm:$0xff] }
  0xf1   :  { %693 = vmatpush3.msra.mxu0 %v399_v44 }
  0xf2   :  { %v142_v48 = vrot.slane %v139_v47, 4  ;;  %v150_v49 = vmul.f32 %v139_v47, %v139_v47  ;;  %694 = vmatprep.subr.mxu0 %v414_v45  ;;  %v359_v45 = vunpack.c.0.s8 %v358_v41 }
  0xf3   :  { %695 = vmatpush3.msra.mxu0 %v398_v46 }
  0xf4   :  { %v143_v50 = vadd.f32 %v142_v48, %v139_v47  ;;  %v151_v51 = vrot.slane %v150_v49, 4  ;;  %v397_v48 = vld [vmem:[%s1174_s3] sm:$0xff] }
  0xf6   :  { %v144_v52 = vrot.slane %v143_v50, 2  ;;  %v152_v53 = vadd.f32 %v151_v51, %v150_v49  ;;  %v178_v49 = vld [vmem:[#allocation5 + $0x3] sm:$0x3] }
  0xf7   :  { %v215_v51 = vrot.slane %v178_v49, %v1011_v7 }
  0xf8   :  { %v145_v54 = vadd.f32 %v144_v52, %v143_v50  ;;  %v153_v55 = vrot.slane %v152_v53, 2  ;;  %v1114_v50 = vsub.s32 1, %v1008_v5 }
  0xfa   :  { %v154_v56 = vadd.f32 %v153_v55, %v152_v53  ;;  %v146_v57 = vrot.slane %v145_v54, 1  ;;  %v219_v52 = vrot.slane %v178_v49, %v1114_v50  ;;  %v347_v42 = vrot.slane %v297_v38, %v1114_v50 }
  0xfc   :  { %v155_v58 = vrot.slane %v154_v56, 1  ;;  %v147_v59 = vadd.f32 %v146_v57, %v145_v54 }
  0xfe   :  { %v156_v60 = vadd.f32 %v155_v58, %v154_v56  ;;  %v149_v61 = vmul.f32 0.125, %v147_v59 }
 0x100   :  { %v157_v62 = vmul.f32 0.125, %v156_v60  ;;  %v158_v63 = vmul.f32 %v149_v61, %v149_v61 }
 0x102   :  { %v159_v1 = vsub.f32 %v157_v62, %v158_v63 }
 0x104   :  { %v160_v2 = vmax.f32 %v159_v1, 0.0 }
 0x106   :  { %v161_v3 = vadd.f32 1e-05, %v160_v2 }
 0x108   :  { %754 = vrsqrt.f32 %v161_v3 }
 0x115   :  { %v755_v8 = vpop.eup %754 }
 0x116   :  { %v163_v9 = vmul.f32 %v755_v8, %v140_v6 }
 0x118   :  { %v164_v11 = vmul.f32 %v163_v9, %v149_v61  ;;  %v169_v12 = vrot.slane %v163_v9, %v1011_v7 }
 0x11a   :  { %v165_v13 = vsub.f32 %v141_v10, %v164_v11  ;;  %v170_v14 = vmul.f32 %v169_v12, %v139_v47  ;;  %v413_v47 = vld [vmem:[%s1174_s3 + $0x80] sm:$0xff] }
 0x11b   :  { %696 = vmatprep.subr.mxu0 %v413_v47 }
 0x11c   :  { %v175_v15 = vrot.slane %v165_v13, %v1011_v7  ;;  %697 = vmatpush3.msra.mxu0 %v397_v48 }
 0x11e   :  { %v177_v16 = vadd.f32 %v175_v15, %v170_v14 }
 0x120   :  { %287 = vmatmul.mubr.f32.vlgmr.msra.gmra.mxu1 %v177_v16 }
 0x121   :  { %745 = vmatprep.mubr.msk.f32.mxu1 %vm831_vm0, %v830_v0 }
 0x1e0   :  { %v288_v53 = vpop.f32.mrf.mxu1 }
 0x1e1   :  { %v289_v54 = vadd.f32 %v288_v53, %v215_v51  ;;  %v362_v51 = vsub.s32 %v359_v45, %v1008_v5  ;;  %v554_v5 = vld [vmem:[%s1175_s4 + $0x38] sm:$0xff] }
 0x1e2   :  { %v290_v55 = vpop.f32.mrf.mxu1  ;;  %730 = vmatpush3.msra.mxu1 %v554_v5 }
 0x1e3   :  { %v293_v56 = vmul.f32 0.2, %v289_v54  ;;  %v291_v57 = vadd.f32 %v290_v55, %v219_v52  ;;  %731 = vmatprep.subr.mxu1 %v830_v0 }
 0x1e5   :  { %v1118_v58 = vmax.f32 %v289_v54, %v293_v56  ;;  %v294_v59 = vmul.f32 0.2, %v291_v57  ;;  %v298_v54 = vld [vmem:[#allocation5 + $0x7] sm:$0x3] }
 0x1e7   :  { %v299_v60 = vrot.slane %v1118_v58, 4  ;;  %v313_v61 = vmul.f32 %v1118_v58, %v1118_v58  ;;  %v296_v62 = vmax.f32 %v291_v57, %v294_v59 }
 0x1e9   :  { %v300_v63 = vadd.f32 %v299_v60, %v1118_v58  ;;  %v315_v1 = vrot.slane %v313_v61, 4  ;;  %v305_v2 = vrot.slane %v296_v62, 4  ;;  %v314_v3 = vmul.f32 %v296_v62, %v296_v62 }
 0x1eb   :  { %v301_v4 = vrot.slane %v300_v63, 2  ;;  %v316_v6 = vadd.f32 %v315_v1, %v313_v61  ;;  %v306_v8 = vadd.f32 %v305_v2, %v296_v62  ;;  %v321_v9 = vrot.slane %v314_v3, 4 }
 0x1ed   :  { %v302_v10 = vadd.f32 %v301_v4, %v300_v63  ;;  %v317_v11 = vrot.slane %v316_v6, 2  ;;  %v307_v12 = vrot.slane %v306_v8, 2  ;;  %v322_v13 = vadd.f32 %v321_v9, %v314_v3  ;;  %v550_v4 = vld [vmem:[%s1175_s4 + $0x18] sm:$0xff]  ;;  %v547_v9 = vld [vmem:[%s1175_s4] sm:$0xff] }
 0x1ef   :  { %v303_v14 = vrot.slane %v302_v10, 1  ;;  %v318_v15 = vadd.f32 %v317_v11, %v316_v6  ;;  %v308_v16 = vadd.f32 %v307_v12, %v306_v8  ;;  %v323_v17 = vrot.slane %v322_v13, 2  ;;  %v549_v6 = vld [vmem:[%s1175_s4 + $0x10] sm:$0xff]  ;;  %v548_v8 = vld [vmem:[%s1175_s4 + $0x8] sm:$0xff] }
 0x1f0   :  { %v654_v11 = vld [vmem:[#allocation5 + $0x9] ss:$0 sm:$0xff] }
 0x1f1   :  { %v304_v18 = vadd.f32 %v303_v14, %v302_v10  ;;  %v319_v19 = vrot.slane %v318_v15, 1  ;;  %v309_v20 = vrot.slane %v308_v16, 1  ;;  %v324_v21 = vadd.f32 %v323_v17, %v322_v13 }
 0x1f3   :  { %v311_v22 = vmul.f32 0.125, %v304_v18  ;;  %v320_v23 = vadd.f32 %v319_v19, %v318_v15  ;;  %v325_v24 = vrot.slane %v324_v21, 1  ;;  %v310_v25 = vadd.f32 %v309_v20, %v308_v16 }
 0x1f5   :  { %v327_v26 = vmul.f32 0.125, %v320_v23  ;;  %v329_v27 = vmul.f32 %v311_v22, %v311_v22  ;;  %v326_v28 = vadd.f32 %v325_v24, %v324_v21  ;;  %v312_v29 = vmul.f32 0.125, %v310_v25 }
 0x1f7   :  { %v331_v30 = vsub.f32 %v327_v26, %v329_v27  ;;  %v328_v31 = vmul.f32 0.125, %v326_v28  ;;  %v330_v32 = vmul.f32 %v312_v29, %v312_v29 }
 0x1f9   :  { %v333_v33 = vmax.f32 %v331_v30, 0.0  ;;  %v332_v34 = vsub.f32 %v328_v31, %v330_v32 }
 0x1fb   :  { %v335_v35 = vadd.f32 1e-05, %v333_v33  ;;  %v334_v36 = vmax.f32 %v332_v34, 0.0 }
 0x1fd   :  { %756 = vrsqrt.f32 %v335_v35  ;;  %v336_v37 = vadd.f32 1e-05, %v334_v36 }
 0x1ff   :  { %758 = vrsqrt.f32 %v336_v37  ;;  %v507_v37 = vld [vmem:[#allocation5 + $0xa] sm:$0x1] }
 0x20a   :  { %v757_v43 = vpop.eup %756 }
 0x20b   :  { %v350_v44 = vmul.f32 %v757_v43, %v343_v39 }
 0x20c   :  { %v759_v46 = vpop.eup %758 }
 0x20d   :  { %v351_v47 = vmul.f32 %v759_v46, %v347_v42  ;;  %v352_v48 = vmul.f32 %v350_v44, %v311_v22  ;;  %v376_v57 = vrot.slane %v350_v44, %v1011_v7 }
 0x20f   :  { %v353_v49 = vmul.f32 %v351_v47, %v312_v29  ;;  %v380_v56 = vrot.slane %v351_v47, %v1011_v7  ;;  %v381_v63 = vmul.f32 %v376_v57, %v1118_v58  ;;  %v551_v58 = vld [vmem:[%s1175_s4 + $0x20] sm:$0xff]  ;;  %v655_v47 = vld [vmem:[#allocation5 + $0xc] ss:$0 sm:$0xff] }
 0x211   :  { %v356_v52 = vcombine.low %v352_v48, %v353_v49  ;;  %v382_v60 = vmul.f32 %v380_v56, %v296_v62  ;;  %v553_v62 = vld [vmem:[%s1175_s4 + $0x30] sm:$0xff] }
 0x212   :  { %732 = vmatpush3.msra.mxu1 %v553_v62 }
 0x213   :  { %v363_v53 = vrot.slane %v356_v52, %v362_v51  ;;  %733 = vmatprep.subr.mxu1 %v830_v0 }
 0x215   :  { %v370_v55 = vrot.slane %v363_v53, %v362_v51 }
 0x217   :  { %v372_v59 = vsub.f32 %v298_v54, %v370_v55 }
 0x219   :  { %v391_v61 = vrot.slane %v372_v59, %v1114_v50  ;;  %v387_v1 = vrot.slane %v372_v59, %v1011_v7  ;;  %v552_v50 = vld [vmem:[%s1175_s4 + $0x28] sm:$0xff]  ;;  %s833_s4 = smov [#allocation7]  }
 0x21a   :  { %734 = vmatpush3.msra.mxu1 %v552_v50  ;;  %s642_s27 = sshll.u32 %s833_s4, 4  ;;  %s643_s27 = int_to_ptr.vmem [resolvable:$true] %s642_s27 }
 0x21b   :  { %v395_v2 = vadd.f32 %v391_v61, %v382_v60  ;;  %v394_v3 = vadd.f32 %v387_v1, %v381_v63  ;;  %735 = vmatprep.subr.mxu1 %v830_v0  ;;  %s802_s1 = scalar_lea.vmem %s643_s27, 128  ;;  %p807_p11 = scmp.lt.s32.totalorder %s643_s27, %s643_s27 }
 0x21c   :  { %736 = vmatpush3.msra.mxu1 %v551_v58  ;;  %p803_p10 = scmp.ne.s32.totalorder %s643_s27, %s802_s1  ;;  %p808_p12 = scmp.lt.s32.totalorder %s802_s1, %s802_s1 }
 0x21d   :  { %499 = vmatprep.mubr.f32.mxu0 %v395_v2  ;;  %737 = vmatprep.subr.mxu1 %v830_v0 }
 0x21e   :  { %500 = vmatmul.mubr.f32.vlgmr.msra.gmra.mxu0 %v394_v3  ;;  %738 = vmatpush3.msra.mxu1 %v550_v4  ;;  %p809_p13 = por %p808_p12, %p807_p11 }
 0x21f   :  { %739 = vmatprep.subr.mxu1 %v830_v0 }
 0x220   :  { %740 = vmatpush3.msra.mxu1 %v549_v6  ;;  %p810_p0 = pnand %p809_p13, %p803_p10 }
 0x221   :  { %741 = vmatprep.subr.mxu1 %v830_v0 }
 0x222   :  { %742 = vmatpush3.msra.mxu1 %v548_v8 }
 0x223   :  { %743 = vmatprep.subr.mxu1 %v830_v0 }
 0x224   :  { %744 = vmatpush3.msra.mxu1 %v547_v9 }
 0x2de   :  { %v698_v10 = vpop.f32.mrf.mxu0 }
 0x2e0   :  { %v699_v12 = vpop.f32.mrf.mxu0 }
 0x2e1   :  { %v700_v13 = vadd.f32 %v699_v12, %v698_v10 }
 0x2e3   :  { %v502_v14 = vadd.f32 %v700_v13, %v654_v11 }
 0x2e5   :  { %v505_v15 = vmul.f32 0.2, %v502_v14 }
 0x2e7   :  { %v506_v16 = vmax.f32 %v502_v14, %v505_v15 }
 0x2e9   :  { %v509_v17 = vsel %vm64_vm1, %v506_v16, 0.0  ;;  %v517_v18 = vmul.f32 %v506_v16, %v506_v16 }
 0x2ea   :  { %v510_v19 = vrot.slane %v509_v17, 4 }
 0x2eb   :  { %v518_v20 = vsel %vm64_vm1, %v517_v18, 0.0 }
 0x2ec   :  { %v511_v21 = vadd.f32 %v510_v19, %v509_v17  ;;  %v519_v0 = vrot.slane %v518_v20, 4 }
 0x2ee   :  { %v512_v22 = vrot.slane %v511_v21, 2  ;;  %v520_v23 = vadd.f32 %v519_v0, %v518_v20 }
 0x2f0   :  { %v513_v24 = vadd.f32 %v512_v22, %v511_v21  ;;  %v521_v25 = vrot.slane %v520_v23, 2 }
 0x2f2   :  { %v514_v26 = vrot.slane %v513_v24, 1  ;;  %v522_v27 = vadd.f32 %v521_v25, %v520_v23 }
 0x2f4   :  { %v515_v28 = vadd.f32 %v514_v26, %v513_v24  ;;  %v523_v29 = vrot.slane %v522_v27, 1 }
 0x2f6   :  { %v516_v30 = vmul.f32 0.125, %v515_v28  ;;  %v524_v31 = vadd.f32 %v523_v29, %v522_v27 }
 0x2f8   :  { %v525_v32 = vmul.f32 0.125, %v524_v31  ;;  %v526_v33 = vmul.f32 %v516_v30, %v516_v30 }
 0x2fa   :  { %v527_v34 = vsub.f32 %v525_v32, %v526_v33 }
 0x2fc   :  { %v528_v35 = vmax.f32 %v527_v34, 0.0 }
 0x2fe   :  { %v529_v36 = vadd.f32 1e-05, %v528_v35 }
 0x300   :  { %760 = vrsqrt.f32 %v529_v36 }
 0x30d   :  { %v761_v38 = vpop.eup %760 }
 0x30e   :  { %v531_v39 = vmul.f32 %v761_v38, %v507_v37 }
 0x310   :  { %v532_v41 = vmul.f32 %v531_v39, %v516_v30  ;;  %v537_v42 = vrot.slane %v531_v39, %v1011_v7 }
 0x312   :  { %v533_v43 = vsub.f32 %v508_v40, %v532_v41  ;;  %v538_v44 = vmul.f32 %v537_v42, %v506_v16 }
 0x314   :  { %v543_v45 = vrot.slane %v533_v43, %v1011_v7 }
 0x316   :  { %v545_v46 = vadd.f32 %v543_v45, %v538_v44 }
 0x318   :  { %746 = vmatmul.mubr.msk.f32.vlgmr.msra.gmra.mxu1 %vm64_vm1, %v545_v46 }
 0x3d8   :  { %v630_v48 = vpop.f32.mrf.mxu1 }
 0x3d9   :  { %v631_v49 = vadd.f32 %v655_v47, %v630_v48 }
 0x3da   :  { %v747_v51 = vpop.f32.mrf.mxu1 }
 0x3db   :  { %v634_v52 = vmax.f32 %v631_v49, 0.0 }
 0x3dd   :  { %635 = vst [vmem:[#allocation7] sm:$0xff] %v634_v52 }
 0x3de   :  { %813 = shalt.err (!%p810_p0)
}
 0x3df   :  { %645 = dma.vmem_to_hbm [thread:$0]  %s643_s27, 128, %s1177_s6, [#allocation4]  }
 0x3e0   :  { %826 = dma.done.wait [#allocation4], 128  }
 0x3e1   :  { %827 = vsyncadd [#allocation4], 4294967168 }
 0x3e2   :  { %649 = vsyncpa [#allocation3], 1 }
 0x3e3   :  { %650 = vsyncpa [#allocation6], 1 }
 0x3e4   :  { %651 = vsyncpa [#allocation4], 1 }

</bundles_post_ra>
